<compile_context>
chip_gen: v5e
topology: v5e:2x2
jax: 0.10.0
libtpu: 0.0.40
codegen_flags: <defaults>
</compile_context>

<pallas_src>
import functools

import jax
import jax.numpy as jnp
from jax.experimental import pallas as pl
from jax.experimental.pallas import tpu as pltpu


def _round_up(x, m):
    return ((x + m - 1) // m) * m


def _vae_kernel(x_ref, eps_ref,
                w1_ref, b1_ref, w2_ref, b2_ref,
                w3_ref, b3_ref, w4_ref, b4_ref,
                recon_ref, mu_ref, logvar_ref, z_ref):
    """One TB-row batch tile of the full VAE forward."""
    f32 = jnp.float32
    bf16 = jnp.bfloat16
    F = w3_ref.shape[0]                      # latent width (static)

    # encoder layer 1 + ReLU   (bf16 MXU operands, f32 accumulation)
    x = x_ref[...].astype(bf16)
    h1 = jnp.dot(x, w1_ref[...], preferred_element_type=f32) + b1_ref[...]
    h1 = jnp.maximum(h1, 0.0)

    # encoder layer 2 -> [mu | logvar] in a single MXU pass
    enc = jnp.dot(h1.astype(bf16), w2_ref[...], preferred_element_type=f32) + b2_ref[...]
    mu = enc[:, :F]
    logvar = enc[:, F:]

    # reparameterize:  z = mu + eps * exp(0.5 * logvar)
    z = mu + eps_ref[...] * jnp.exp(0.5 * logvar)

    # decoder layer 1 + ReLU
    h2 = jnp.dot(z.astype(bf16), w3_ref[...], preferred_element_type=f32) + b3_ref[...]
    h2 = jnp.maximum(h2, 0.0)

    # decoder layer 2 + exact sigmoid
    logits = jnp.dot(h2.astype(bf16), w4_ref[...], preferred_element_type=f32) + b4_ref[...]
    recon_ref[...] = (1.0 / (1.0 + jnp.exp(-logits))).astype(recon_ref.dtype)

    mu_ref[...] = mu
    logvar_ref[...] = logvar
    z_ref[...] = z


def init_params(key, initial_feature_dim=102, hidden_dim=64, num_features=16):
    """Synthetic parameters, natural layout: weights stored [in, out], f32."""
    ks = jax.random.split(key, 8)
    scale = 0.05

    def w(k, shape):
        return (scale * jax.random.normal(k, shape)).astype(jnp.float32)

    return {
        "w1": w(ks[0], (initial_feature_dim, hidden_dim)),   # enc1
        "b1": w(ks[1], (1, hidden_dim)),
        "w2": w(ks[2], (hidden_dim, 2 * num_features)),      # enc2
        "b2": w(ks[3], (1, 2 * num_features)),
        "w3": w(ks[4], (num_features, hidden_dim)),          # dec1
        "b3": w(ks[5], (1, hidden_dim)),
        "w4": w(ks[6], (hidden_dim, initial_feature_dim)),   # dec2
        "b4": w(ks[7], (1, initial_feature_dim)),
    }


def pack_params(params):
    """One-time packing (outside jit): matmul weights -> bf16, biases stay f32.
    Shapes stay in their natural, unpadded layout (full-dim blocks are legal)."""
    bf16 = jnp.bfloat16
    f32 = jnp.float32
    return {
        "w1": params["w1"].astype(bf16), "b1": params["b1"].astype(f32),
        "w2": params["w2"].astype(bf16), "b2": params["b2"].astype(f32),
        "w3": params["w3"].astype(bf16), "b3": params["b3"].astype(f32),
        "w4": params["w4"].astype(bf16), "b4": params["b4"].astype(f32),
    }


@functools.partial(jax.jit, static_argnames=("block_rows",))
def vanilla_vae_forward(x, packed, key, *, block_rows=4096):
    """Fused VanillaVAE forward.  x: [B, D] f32, key: jax PRNG key.
    Returns (recon [B,D], mu [B,F], logvar [B,F], z [B,F]), all f32."""
    B, D = x.shape
    H = packed["w1"].shape[1]
    F = packed["w3"].shape[0]

    # Batch tiling: TB rows per grid step (multiple of 8).  Large TB keeps the
    # ~0.35us per-step overhead negligible; the batch axis is "parallel" so a
    # multi-TensorCore part shards the grid when n_blk >= 2.
    B8 = _round_up(B, 8)
    TB = max(8, min(_round_up(block_rows, 8), B8))
    B_pad = _round_up(B8, TB)
    n_blk = B_pad // TB

    # No pre-pad / layout pass unless the batch itself needs rounding.
    x_in = x if B_pad == B else jnp.zeros((B_pad, D), x.dtype).at[:B, :].set(x)
    eps = jax.random.normal(key, (B_pad, F), dtype=jnp.float32)

    const = lambda i: (0, 0)
    batch = lambda i: (i, 0)

    grid_spec = pltpu.PrefetchScalarGridSpec(
        num_scalar_prefetch=0,
        grid=(n_blk,),
        in_specs=[
            pl.BlockSpec((TB, D), batch),       # x   (natural f32 layout)
            pl.BlockSpec((TB, F), batch),       # eps
            pl.BlockSpec((D, H), const),        # w1  (resident)
            pl.BlockSpec((1, H), const),        # b1
            pl.BlockSpec((H, 2 * F), const),    # w2
            pl.BlockSpec((1, 2 * F), const),    # b2
            pl.BlockSpec((F, H), const),        # w3
            pl.BlockSpec((1, H), const),        # b3
            pl.BlockSpec((H, D), const),        # w4
            pl.BlockSpec((1, D), const),        # b4
        ],
        out_specs=(
            pl.BlockSpec((TB, D), batch),       # recon (full-width, no strip)
            pl.BlockSpec((TB, F), batch),       # mu
            pl.BlockSpec((TB, F), batch),       # logvar
            pl.BlockSpec((TB, F), batch),       # z
        ),
    )

    param_bytes = sum(int(v.size) * v.dtype.itemsize for v in packed.values())
    cost = pl.CostEstimate(
        flops=2 * B_pad * (D * H + H * 2 * F + F * H + H * D),
        transcendentals=B_pad * (D + F),
        bytes_accessed=(B_pad * D * 4            # x read (f32)
                        + B_pad * F * 4          # eps read
                        + param_bytes            # weights fetched once
                        + B_pad * D * 4          # recon write
                        + 3 * B_pad * F * 4),    # mu / logvar / z write
    )

    recon, mu, logvar, z = pl.pallas_call(
        _vae_kernel,
        out_shape=(
            jax.ShapeDtypeStruct((B_pad, D), jnp.float32),
            jax.ShapeDtypeStruct((B_pad, F), jnp.float32),
            jax.ShapeDtypeStruct((B_pad, F), jnp.float32),
            jax.ShapeDtypeStruct((B_pad, F), jnp.float32),
        ),
        grid_spec=grid_spec,
        compiler_params=pltpu.CompilerParams(
            dimension_semantics=("parallel",),
            vmem_limit_bytes=32 * 1024 * 1024,
        ),
        cost_estimate=cost,
    )(
        x_in, eps,
        packed["w1"], packed["b1"], packed["w2"], packed["b2"],
        packed["w3"], packed["b3"], packed["w4"], packed["b4"],
    )

    if B_pad != B:
        recon, mu, logvar, z = recon[:B], mu[:B], logvar[:B], z[:B]
    return recon, mu, logvar, z


# ---------------- pure-JAX reference (same bf16 matmul casts) ----------------

def _dot_bf16(a, w):
    return jnp.dot(a.astype(jnp.bfloat16), w.astype(jnp.bfloat16),
                   preferred_element_type=jnp.float32)


def _reference_forward(x, params, eps):
    F = params["w3"].shape[0]
    h1 = jnp.maximum(_dot_bf16(x, params["w1"]) + params["b1"], 0.0)
    enc = _dot_bf16(h1, params["w2"]) + params["b2"]
    mu, logvar = enc[:, :F], enc[:, F:]
    z = mu + eps * jnp.exp(0.5 * logvar)
    h2 = jnp.maximum(_dot_bf16(z, params["w3"]) + params["b3"], 0.0)
    recon = jax.nn.sigmoid(_dot_bf16(h2, params["w4"]) + params["b4"])
    return recon, mu, logvar, z


if __name__ == "__main__":
    INITIAL_FEATURE_DIM = 102
    HIDDEN_DIM = 64
    NUM_FEATURES = 16
    BATCH = 8

    root = jax.random.PRNGKey(0)
    k_params, k_x, k_eps = jax.random.split(root, 3)

    params = init_params(k_params, initial_feature_dim=INITIAL_FEATURE_DIM,
                         hidden_dim=HIDDEN_DIM, num_features=NUM_FEATURES)
    packed = pack_params(params)
    x = jax.random.normal(k_x, (BATCH, INITIAL_FEATURE_DIM), dtype=jnp.float32)

    recon, mu, logvar, z = vanilla_vae_forward(x, packed, k_eps)
    jax.block_until_ready((recon, mu, logvar, z))

    # shape checks
    assert recon.shape == (BATCH, INITIAL_FEATURE_DIM)
    assert mu.shape == (BATCH, NUM_FEATURES)
    assert logvar.shape == (BATCH, NUM_FEATURES)
    assert z.shape == (BATCH, NUM_FEATURES)

    # the whole forward is deterministic given eps -> check everything against
    # the pure-JAX reference using the SAME eps draw the wrapper made
    eps = jax.random.normal(k_eps, (BATCH, NUM_FEATURES), dtype=jnp.float32)
    recon_ref, mu_ref, lv_ref, z_ref = _reference_forward(x, params, eps)

    assert jnp.allclose(mu, mu_ref, atol=2e-2), float(jnp.max(jnp.abs(mu - mu_ref)))
    assert jnp.allclose(logvar, lv_ref, atol=2e-2), float(jnp.max(jnp.abs(logvar - lv_ref)))
    assert jnp.allclose(z, z_ref, atol=2e-2), float(jnp.max(jnp.abs(z - z_ref)))
    assert jnp.allclose(recon, recon_ref, atol=2e-2), float(jnp.max(jnp.abs(recon - recon_ref)))

    # sanity: implied eps is finite, recon is a valid sigmoid output
    imp_eps = (z - mu) / jnp.exp(0.5 * logvar)
    assert bool(jnp.all(jnp.isfinite(imp_eps)))
    assert bool(jnp.all((recon > -1e-6) & (recon < 1.0 + 1e-6)))

    print("KERNEL_OK")
</pallas_src>

<mosaic_0001>
module attributes {stable_mosaic.version = 11 : i64} {
  func.func @_vae_kernel(%arg0: i32, %arg1: memref<8x102xf32, #tpu.memory_space<vmem>>, %arg2: memref<8x16xf32, #tpu.memory_space<vmem>>, %arg3: memref<102x64xbf16, #tpu.memory_space<vmem>>, %arg4: memref<1x64xf32, #tpu.memory_space<vmem>>, %arg5: memref<64x32xbf16, #tpu.memory_space<vmem>>, %arg6: memref<1x32xf32, #tpu.memory_space<vmem>>, %arg7: memref<16x64xbf16, #tpu.memory_space<vmem>>, %arg8: memref<1x64xf32, #tpu.memory_space<vmem>>, %arg9: memref<64x102xbf16, #tpu.memory_space<vmem>>, %arg10: memref<1x102xf32, #tpu.memory_space<vmem>>, %arg11: memref<8x102xf32, #tpu.memory_space<vmem>>, %arg12: memref<8x16xf32, #tpu.memory_space<vmem>>, %arg13: memref<8x16xf32, #tpu.memory_space<vmem>>, %arg14: memref<8x16xf32, #tpu.memory_space<vmem>>) attributes {dimension_semantics = [#tpu.dimension_semantics<parallel>], iteration_bounds = array<i64: 1>, scalar_prefetch = 0 : i64, scratch_operands = 0 : i64, tpu.core_type = #tpu.core_type<tc>, window_params = [{transform_indices = @transform_0, window_bounds = array<i64: 8, 102>}, {transform_indices = @transform_1, window_bounds = array<i64: 8, 16>}, {pipeline_mode = #tpu.pipeline_mode<synchronous>, transform_indices = @transform_2, window_bounds = array<i64: 102, 64>}, {pipeline_mode = #tpu.pipeline_mode<synchronous>, transform_indices = @transform_3, window_bounds = array<i64: 1, 64>}, {pipeline_mode = #tpu.pipeline_mode<synchronous>, transform_indices = @transform_4, window_bounds = array<i64: 64, 32>}, {pipeline_mode = #tpu.pipeline_mode<synchronous>, transform_indices = @transform_5, window_bounds = array<i64: 1, 32>}, {pipeline_mode = #tpu.pipeline_mode<synchronous>, transform_indices = @transform_6, window_bounds = array<i64: 16, 64>}, {pipeline_mode = #tpu.pipeline_mode<synchronous>, transform_indices = @transform_7, window_bounds = array<i64: 1, 64>}, {pipeline_mode = #tpu.pipeline_mode<synchronous>, transform_indices = @transform_8, window_bounds = array<i64: 64, 102>}, {pipeline_mode = #tpu.pipeline_mode<synchronous>, transform_indices = @transform_9, window_bounds = array<i64: 1, 102>}, {transform_indices = @transform_10, window_bounds = array<i64: 8, 102>}, {transform_indices = @transform_11, window_bounds = array<i64: 8, 16>}, {transform_indices = @transform_12, window_bounds = array<i64: 8, 16>}, {transform_indices = @transform_13, window_bounds = array<i64: 8, 16>}]} {
    %c0 = arith.constant 0 : index
    %c0_0 = arith.constant 0 : index
    %0 = vector.load %arg1[%c0, %c0_0] : memref<8x102xf32, #tpu.memory_space<vmem>>, vector<8x102xf32>
    %1 = arith.truncf %0 : vector<8x102xf32> to vector<8x102xbf16>
    %c0_1 = arith.constant 0 : index
    %c0_2 = arith.constant 0 : index
    %2 = vector.load %arg3[%c0_1, %c0_2] : memref<102x64xbf16, #tpu.memory_space<vmem>>, vector<102x64xbf16>
    %cst = arith.constant dense<0.000000e+00> : vector<8x64xf32>
    %3 = tpu.matmul %1, %2, %cst {dimension_numbers = #tpu.dot_dimension_numbers<[1], [0], [0], [1], [0, 0, 1, 1], [], []>} : vector<8x102xbf16>, vector<102x64xbf16>, vector<8x64xf32> -> vector<8x64xf32>
    %c0_3 = arith.constant 0 : index
    %c0_4 = arith.constant 0 : index
    %4 = vector.load %arg4[%c0_3, %c0_4] : memref<1x64xf32, #tpu.memory_space<vmem>>, vector<1x64xf32>
    %5 = vector.broadcast %4 : vector<1x64xf32> to vector<8x64xf32>
    %6 = arith.addf %3, %5 : vector<8x64xf32>
    %cst_5 = arith.constant 0.000000e+00 : f32
    %7 = vector.broadcast %cst_5 : f32 to vector<8x64xf32>
    %8 = arith.maximumf %6, %7 : vector<8x64xf32>
    %9 = arith.truncf %8 : vector<8x64xf32> to vector<8x64xbf16>
    %c0_6 = arith.constant 0 : index
    %c0_7 = arith.constant 0 : index
    %10 = vector.load %arg5[%c0_6, %c0_7] : memref<64x32xbf16, #tpu.memory_space<vmem>>, vector<64x32xbf16>
    %cst_8 = arith.constant dense<0.000000e+00> : vector<8x32xf32>
    %11 = tpu.matmul %9, %10, %cst_8 {dimension_numbers = #tpu.dot_dimension_numbers<[1], [0], [0], [1], [0, 0, 1, 1], [], []>} : vector<8x64xbf16>, vector<64x32xbf16>, vector<8x32xf32> -> vector<8x32xf32>
    %c0_9 = arith.constant 0 : index
    %c0_10 = arith.constant 0 : index
    %12 = vector.load %arg6[%c0_9, %c0_10] : memref<1x32xf32, #tpu.memory_space<vmem>>, vector<1x32xf32>
    %13 = vector.broadcast %12 : vector<1x32xf32> to vector<8x32xf32>
    %14 = arith.addf %11, %13 : vector<8x32xf32>
    %15 = vector.extract_strided_slice %14 {offsets = [0, 0], sizes = [8, 16], strides = [1, 1]} : vector<8x32xf32> to vector<8x16xf32>
    %16 = vector.extract_strided_slice %14 {offsets = [0, 16], sizes = [8, 16], strides = [1, 1]} : vector<8x32xf32> to vector<8x16xf32>
    %c0_11 = arith.constant 0 : index
    %c0_12 = arith.constant 0 : index
    %17 = vector.load %arg2[%c0_11, %c0_12] : memref<8x16xf32, #tpu.memory_space<vmem>>, vector<8x16xf32>
    %cst_13 = arith.constant 5.000000e-01 : f32
    %18 = vector.broadcast %cst_13 : f32 to vector<8x16xf32>
    %19 = arith.mulf %18, %16 : vector<8x16xf32>
    %20 = math.exp %19 : vector<8x16xf32>
    %21 = arith.mulf %17, %20 : vector<8x16xf32>
    %22 = arith.addf %15, %21 : vector<8x16xf32>
    %23 = arith.truncf %22 : vector<8x16xf32> to vector<8x16xbf16>
    %c0_14 = arith.constant 0 : index
    %c0_15 = arith.constant 0 : index
    %24 = vector.load %arg7[%c0_14, %c0_15] : memref<16x64xbf16, #tpu.memory_space<vmem>>, vector<16x64xbf16>
    %cst_16 = arith.constant dense<0.000000e+00> : vector<8x64xf32>
    %25 = tpu.matmul %23, %24, %cst_16 {dimension_numbers = #tpu.dot_dimension_numbers<[1], [0], [0], [1], [0, 0, 1, 1], [], []>} : vector<8x16xbf16>, vector<16x64xbf16>, vector<8x64xf32> -> vector<8x64xf32>
    %c0_17 = arith.constant 0 : index
    %c0_18 = arith.constant 0 : index
    %26 = vector.load %arg8[%c0_17, %c0_18] : memref<1x64xf32, #tpu.memory_space<vmem>>, vector<1x64xf32>
    %27 = vector.broadcast %26 : vector<1x64xf32> to vector<8x64xf32>
    %28 = arith.addf %25, %27 : vector<8x64xf32>
    %cst_19 = arith.constant 0.000000e+00 : f32
    %29 = vector.broadcast %cst_19 : f32 to vector<8x64xf32>
    %30 = arith.maximumf %28, %29 : vector<8x64xf32>
    %31 = arith.truncf %30 : vector<8x64xf32> to vector<8x64xbf16>
    %c0_20 = arith.constant 0 : index
    %c0_21 = arith.constant 0 : index
    %32 = vector.load %arg9[%c0_20, %c0_21] : memref<64x102xbf16, #tpu.memory_space<vmem>>, vector<64x102xbf16>
    %cst_22 = arith.constant dense<0.000000e+00> : vector<8x102xf32>
    %33 = tpu.matmul %31, %32, %cst_22 {dimension_numbers = #tpu.dot_dimension_numbers<[1], [0], [0], [1], [0, 0, 1, 1], [], []>} : vector<8x64xbf16>, vector<64x102xbf16>, vector<8x102xf32> -> vector<8x102xf32>
    %c0_23 = arith.constant 0 : index
    %c0_24 = arith.constant 0 : index
    %34 = vector.load %arg10[%c0_23, %c0_24] : memref<1x102xf32, #tpu.memory_space<vmem>>, vector<1x102xf32>
    %35 = vector.broadcast %34 : vector<1x102xf32> to vector<8x102xf32>
    %36 = arith.addf %33, %35 : vector<8x102xf32>
    %cst_25 = arith.constant 0.000000e+00 : f32
    %37 = vector.broadcast %cst_25 : f32 to vector<8x102xf32>
    %38 = arith.subf %37, %36 : vector<8x102xf32>
    %39 = math.exp %38 : vector<8x102xf32>
    %cst_26 = arith.constant 1.000000e+00 : f32
    %40 = vector.broadcast %cst_26 : f32 to vector<8x102xf32>
    %41 = arith.addf %40, %39 : vector<8x102xf32>
    %cst_27 = arith.constant 1.000000e+00 : f32
    %42 = vector.broadcast %cst_27 : f32 to vector<8x102xf32>
    %43 = arith.divf %42, %41 : vector<8x102xf32>
    %c0_28 = arith.constant 0 : index
    %c0_29 = arith.constant 0 : index
    %44 = vector.load %arg11[%c0_28, %c0_29] : memref<8x102xf32, #tpu.memory_space<vmem>>, vector<8x102xf32>
    tpu.vector_store %arg11[%c0_28, %c0_29], %43 {strides = array<i32>} : memref<8x102xf32, #tpu.memory_space<vmem>>, vector<8x102xf32>,
    %c0_30 = arith.constant 0 : index
    %c0_31 = arith.constant 0 : index
    %45 = vector.load %arg12[%c0_30, %c0_31] : memref<8x16xf32, #tpu.memory_space<vmem>>, vector<8x16xf32>
    tpu.vector_store %arg12[%c0_30, %c0_31], %15 {strides = array<i32>} : memref<8x16xf32, #tpu.memory_space<vmem>>, vector<8x16xf32>,
    %c0_32 = arith.constant 0 : index
    %c0_33 = arith.constant 0 : index
    %46 = vector.load %arg13[%c0_32, %c0_33] : memref<8x16xf32, #tpu.memory_space<vmem>>, vector<8x16xf32>
    tpu.vector_store %arg13[%c0_32, %c0_33], %16 {strides = array<i32>} : memref<8x16xf32, #tpu.memory_space<vmem>>, vector<8x16xf32>,
    %c0_34 = arith.constant 0 : index
    %c0_35 = arith.constant 0 : index
    %47 = vector.load %arg14[%c0_34, %c0_35] : memref<8x16xf32, #tpu.memory_space<vmem>>, vector<8x16xf32>
    tpu.vector_store %arg14[%c0_34, %c0_35], %22 {strides = array<i32>} : memref<8x16xf32, #tpu.memory_space<vmem>>, vector<8x16xf32>,
    return
  }
  func.func @transform_0(%arg0: i32) -> (i32, i32) {
    %c0_i32 = arith.constant 0 : i32
    %c0_i32_0 = arith.constant 0 : i32
    return %arg0, %c0_i32 : i32, i32
  }
  func.func @transform_1(%arg0: i32) -> (i32, i32) {
    %c0_i32 = arith.constant 0 : i32
    %c0_i32_0 = arith.constant 0 : i32
    return %arg0, %c0_i32 : i32, i32
  }
  func.func @transform_2(%arg0: i32) -> (i32, i32) {
    %c0_i32 = arith.constant 0 : i32
    %c0_i32_0 = arith.constant 0 : i32
    %c0_i32_1 = arith.constant 0 : i32
    return %c0_i32, %c0_i32_0 : i32, i32
  }
  func.func @transform_3(%arg0: i32) -> (i32, i32) {
    %c0_i32 = arith.constant 0 : i32
    %c0_i32_0 = arith.constant 0 : i32
    %c0_i32_1 = arith.constant 0 : i32
    return %c0_i32, %c0_i32_0 : i32, i32
  }
  func.func @transform_4(%arg0: i32) -> (i32, i32) {
    %c0_i32 = arith.constant 0 : i32
    %c0_i32_0 = arith.constant 0 : i32
    %c0_i32_1 = arith.constant 0 : i32
    return %c0_i32, %c0_i32_0 : i32, i32
  }
  func.func @transform_5(%arg0: i32) -> (i32, i32) {
    %c0_i32 = arith.constant 0 : i32
    %c0_i32_0 = arith.constant 0 : i32
    %c0_i32_1 = arith.constant 0 : i32
    return %c0_i32, %c0_i32_0 : i32, i32
  }
  func.func @transform_6(%arg0: i32) -> (i32, i32) {
    %c0_i32 = arith.constant 0 : i32
    %c0_i32_0 = arith.constant 0 : i32
    %c0_i32_1 = arith.constant 0 : i32
    return %c0_i32, %c0_i32_0 : i32, i32
  }
  func.func @transform_7(%arg0: i32) -> (i32, i32) {
    %c0_i32 = arith.constant 0 : i32
    %c0_i32_0 = arith.constant 0 : i32
    %c0_i32_1 = arith.constant 0 : i32
    return %c0_i32, %c0_i32_0 : i32, i32
  }
  func.func @transform_8(%arg0: i32) -> (i32, i32) {
    %c0_i32 = arith.constant 0 : i32
    %c0_i32_0 = arith.constant 0 : i32
    %c0_i32_1 = arith.constant 0 : i32
    return %c0_i32, %c0_i32_0 : i32, i32
  }
  func.func @transform_9(%arg0: i32) -> (i32, i32) {
    %c0_i32 = arith.constant 0 : i32
    %c0_i32_0 = arith.constant 0 : i32
    %c0_i32_1 = arith.constant 0 : i32
    return %c0_i32, %c0_i32_0 : i32, i32
  }
  func.func @transform_10(%arg0: i32) -> (i32, i32) {
    %c0_i32 = arith.constant 0 : i32
    %c0_i32_0 = arith.constant 0 : i32
    return %arg0, %c0_i32 : i32, i32
  }
  func.func @transform_11(%arg0: i32) -> (i32, i32) {
    %c0_i32 = arith.constant 0 : i32
    %c0_i32_0 = arith.constant 0 : i32
    return %arg0, %c0_i32 : i32, i32
  }
  func.func @transform_12(%arg0: i32) -> (i32, i32) {
    %c0_i32 = arith.constant 0 : i32
    %c0_i32_0 = arith.constant 0 : i32
    return %arg0, %c0_i32 : i32, i32
  }
  func.func @transform_13(%arg0: i32) -> (i32, i32) {
    %c0_i32 = arith.constant 0 : i32
    %c0_i32_0 = arith.constant 0 : i32
    return %arg0, %c0_i32 : i32, i32
  }
}

</mosaic_0001>

<bundles_post_ra>
// kernel: vanilla_vae_forward.1
= control target key start
LH: loop header
LB: loop body
LE: loop exit
PB: predicated region body
PF: predicated region fallthrough
CT: control target
= control target key end

     0   :  { %19 = vsyncpa [#allocation3], 0  ;;  %s718_s0 = inlined_call_operand.vmem [shape: f32[8,102], index: 0, kind: input, shape index: {}]   ;;  %s719_s1 = inlined_call_operand.vmem [shape: f32[8,16], index: 1, kind: input, shape index: {}]   ;;  %s720_s2 = inlined_call_operand.vmem [shape: bf16[102,64], index: 2, kind: input, shape index: {}]   ;;  %s721_s3 = inlined_call_operand.vmem [shape: f32[1,64], index: 3, kind: input, shape index: {}]   ;;  %s722_s4 = inlined_call_operand.vmem [shape: bf16[64,32], index: 4, kind: input, shape index: {}]   ;;  %s723_s5 = inlined_call_operand.vmem [shape: f32[1,32], index: 5, kind: input, shape index: {}]   ;;  %s724_s6 = inlined_call_operand.vmem [shape: bf16[16,64], index: 6, kind: input, shape index: {}]   ;;  %s725_s7 = inlined_call_operand.vmem [shape: f32[1,64], index: 7, kind: input, shape index: {}]   ;;  %s726_s8 = inlined_call_operand.vmem [shape: bf16[64,102], index: 8, kind: input, shape index: {}]   ;;  %s727_s9 = inlined_call_operand.vmem [shape: f32[1,102], index: 9, kind: input, shape index: {}]   ;;  %s728_s10 = inlined_call_operand.hbm [shape: f32[8,102], index: 10, kind: output, shape index: {0}]   ;;  %s729_s11 = inlined_call_operand.hbm [shape: f32[8,16], index: 11, kind: output, shape index: {1}]   ;;  %s730_s12 = inlined_call_operand.hbm [shape: f32[8,16], index: 12, kind: output, shape index: {2}]   ;;  %s731_s13 = inlined_call_operand.hbm [shape: f32[8,16], index: 13, kind: output, shape index: {3}]  }
   0x1   :  { %20 = vsyncpa [#allocation5], 0  ;;  %v57_v0 = vld [vmem:[%s720_s2 + $0x30] sm:$0x7]  ;;  %vm105_vm0 = vcmask 1042432   ;;  %v434_v2 = vld [vmem:[%s722_s4 + $0x18] sm:$0xff] }
   0x2   :  { %v87_v1 = vunpack.c.l.b16 %v57_v0  ;;  %v433_v4 = vld [vmem:[%s722_s4 + $0x10] sm:$0xff]  ;;  %168 = vmatpush.bf16.msra.mxu1 %v434_v2 }
   0x4   :  { %v94_v3 = vpack.c.b16 %v87_v1, %v87_v1 }
   0x6   :  { %v107_v5 = vsel %vm105_vm0, %v94_v3, 0 }
   0x7   :  { %21 = vsyncpa [#allocation8], 0  ;;  %110 = vmatpush.bf16.msra.mxu0 %v107_v5  ;;  %v430_v6 = vld [vmem:[%s720_s2 + $0x28] sm:$0xff]  ;;  %169 = vmatpush.bf16.msra.mxu1 %v433_v4  ;;  %v429_v7 = vld [vmem:[%s720_s2 + $0x20] sm:$0xff]  ;;  %vm101_vm1 = vcmask 834560   ;;  %vm160_vm2 = vcmask 523264  }
   0x8   :  { %v428_v8 = vld [vmem:[%s720_s2 + $0x18] sm:$0xff]  ;;  %v427_v9 = vld [vmem:[%s720_s2 + $0x10] sm:$0xff]  ;;  %v426_v10 = vld [vmem:[%s720_s2 + $0x8] sm:$0xff]  ;;  %vm200_vm3 = vcmask 130048   ;;  %s316_s29 = sshll.u32 %s729_s11, 4  ;;  %s558_s30 = smov [#allocation4]   ;;  %s317_s29 = int_to_ptr.hbm [resolvable:$true] %s316_s29 }
   0x9   :  { %v425_v11 = vld [vmem:[%s720_s2] sm:$0xff]  ;;  %v432_v14 = vld [vmem:[%s722_s4 + $0x8] sm:$0xff]  ;;  %v439_v30 = vld [vmem:[%s726_s8 + $0x18] sm:$0xff]  ;;  %s314_s14 = sshll.u32 %s558_s30, 4  ;;  %s560_s17 = smov [#allocation7]   ;;  %s315_s14 = int_to_ptr.vmem [resolvable:$true] %s314_s14 }
   0xa   :  { %v43_v12 = vld [vmem:[%s718_s0] sm:$0xff]  ;;  %262 = vmatpush.bf16.msra.mxu3 %v439_v30  ;;  %v438_v31 = vld [vmem:[%s726_s8 + $0x10] sm:$0xff]  ;;  %v437_v38 = vld [vmem:[%s726_s8 + $0x8] sm:$0xff]  ;;  %s327_s0 = sshll.u32 %s730_s12, 4  ;;  %s336_s11 = sshll.u32 %s560_s17, 4  ;;  %s328_s0 = int_to_ptr.hbm [resolvable:$true] %s327_s0  ;;  %s337_s11 = int_to_ptr.vmem [resolvable:$true] %s336_s11 }
   0xb   :  { %111 = vmatpush.bf16.msra.mxu0 %v430_v6  ;;  %v44_v13 = vpack.c.bf16 %v43_v12, %v43_v12  ;;  %170 = vmatpush.bf16.msra.mxu1 %v432_v14  ;;  %v431_v15 = vld [vmem:[%s722_s4] sm:$0xff]  ;;  %s338_s4 = sshll.u32 %s731_s13, 4  ;;  %s561_s12 = smov [#allocation2]   ;;  %s339_s4 = int_to_ptr.hbm [resolvable:$true] %s338_s4 }
   0xc   :  { %v445_v16 = vld [vmem:[%s721_s3] ss:$0 sm:$0xff]  ;;  %s557_s3 = smov 112   ;;  %s303_s13 = sshll.u32 %s561_s12, 4  ;;  %s304_s13 = int_to_ptr.vmem [resolvable:$true] %s303_s13 }
   0xd   :  { %v446_v22 = vld [vmem:[%s723_s5] ss:$0 sm:$0xff]  ;;  %s305_s20 = sshll.u32 %s728_s10, 4  ;;  %s306_s20 = int_to_ptr.hbm [resolvable:$true] %s305_s20 }
   0xe   :  { %v435_v29 = vld [vmem:[%s724_s6] sm:$0xff]  ;;  %263 = vmatpush.bf16.msra.mxu3 %v438_v31 }
   0xf   :  { %112 = vmatpush.bf16.msra.mxu0 %v429_v7  ;;  %171 = vmatpush.bf16.msra.mxu1 %v431_v15  ;;  %v177_v32 = vld [vmem:[%s719_s1] sm:$0xff] }
  0x10   :  { %211 = vmatpush.bf16.msra.mxu2 %v435_v29  ;;  %v436_v39 = vld [vmem:[%s726_s8] sm:$0xff]  ;;  %s559_s8 = smov [#allocation6]  }
  0x11   :  { %v447_v40 = vld [vmem:[%s725_s7] ss:$0 sm:$0xff]  ;;  %s325_s2 = sshll.u32 %s559_s8, 4  ;;  %s326_s2 = int_to_ptr.vmem [resolvable:$true] %s325_s2 }
  0x12   :  { %264 = vmatpush.bf16.msra.mxu3 %v437_v38  ;;  %v448_v46 = vld [vmem:[%s727_s9] ss:$0 sm:$0xff] }
  0x13   :  { %113 = vmatpush.bf16.msra.mxu0 %v428_v8 }
  0x16   :  { %265 = vmatpush.bf16.msra.mxu3 %v436_v39 }
  0x17   :  { %114 = vmatpush.bf16.msra.mxu0 %v427_v9 }
  0x1b   :  { %115 = vmatpush.bf16.msra.mxu0 %v426_v10 }
  0x1f   :  { %116 = vmatpush.bf16.msra.mxu0 %v425_v11 }
  0x22   :  { %385 = vmatmul.msk.bf16.vlgmr.msra.gmra.mxu0 %vm101_vm1, %v44_v13 }
  0x9f   :  { %v118_v17 = vpop.f32.mrf.mxu0 }
  0xa0   :  { %v119_v18 = vadd.f32 %v445_v16, %v118_v17 }
  0xa2   :  { %v122_v19 = vmax.f32 %v119_v18, 0.0 }
  0xa4   :  { %v123_v20 = vpack.c.bf16 %v122_v19, %v122_v19 }
  0xa6   :  { %402 = vmatmul.msk.bf16.vlgmr.msra.gmra.mxu1 %vm160_vm2, %v123_v20 }
  0xa7   :  { %v120_v21 = vpop.f32.mrf.mxu0 }
 0x123   :  { %v173_v23 = vpop.f32.mrf.mxu1 }
 0x124   :  { %v174_v24 = vadd.f32 %v446_v22, %v173_v23 }
 0x126   :  { %v178_v25 = vmul.f32 0.5, %v174_v24  ;;  %291 = vst.msk [vmem:[#allocation4] sm:$0xff] %vm200_vm3, %v174_v24 }
 0x127   :  { %319 = dma.vmem_to_hbm [thread:$0]  %s315_s14, 128, %s317_s29, [#allocation5]  }
 0x128   :  { %v179_v26 = vmul.f32 1.442695, %v178_v25 }
 0x12a   :  { %449 = vpow2.f32 %v179_v26 }
 0x12b   :  { %v175_v27 = vpop.f32.mrf.mxu1 }
 0x130   :  { %v450_v28 = vpop.eup %449 }
 0x131   :  { %182 = vrot.lane.b32.xlu0 %v450_v28, %s557_s3 }
 0x139   :  { %293 = vrot.lane.b32.xlu0 %v174_v24, %s557_s3 }
 0x1a3   :  { %v183_v33 = vpop.permute.xlu0 %182 }
 0x1a4   :  { %v185_v34 = vmul.f32 %v183_v33, %v177_v32 }
 0x1a6   :  { %v186_v35 = vadd.f32 %v185_v34, %v174_v24 }
 0x1a8   :  { %v187_v36 = vpack.c.bf16 %v186_v35, %v186_v35  ;;  %297 = vst.msk [vmem:[#allocation7] sm:$0xff] %vm200_vm3, %v186_v35 }
 0x1a9   :  { %341 = dma.vmem_to_hbm [thread:$0]  %s337_s11, 128, %s339_s4, [#allocation8]  }
 0x1aa   :  { %407 = vmatmul.msk.bf16.vlgmr.msra.gmra.mxu2 %vm200_vm3, %v187_v36 }
 0x1ab   :  { %v294_v37 = vpop.permute.xlu0 %293 }
 0x1ac   :  { %296 = vst.msk [vmem:[#allocation6] sm:$0xff] %vm200_vm3, %v294_v37 }
 0x1ad   :  { %330 = dma.vmem_to_hbm [thread:$0]  %s326_s2, 128, %s328_s0, [#allocation5]  }
 0x22d   :  { %v213_v41 = vpop.f32.mrf.mxu2 }
 0x22e   :  { %v214_v42 = vadd.f32 %v447_v40, %v213_v41 }
 0x230   :  { %v217_v43 = vmax.f32 %v214_v42, 0.0 }
 0x232   :  { %v218_v44 = vpack.c.bf16 %v217_v43, %v217_v43 }
 0x234   :  { %424 = vmatmul.msk.bf16.vlgmr.msra.gmra.mxu3 %vm160_vm2, %v218_v44 }
 0x235   :  { %v215_v45 = vpop.f32.mrf.mxu2 }
 0x2b7   :  { %v267_v47 = vpop.f32.mrf.mxu3 }
 0x2b8   :  { %v268_v48 = vadd.f32 %v448_v46, %v267_v47 }
 0x2ba   :  { %v271_v49 = vsub.f32 0.0, %v268_v48 }
 0x2bc   :  { %v272_v50 = vmul.f32 1.442695, %v271_v49 }
 0x2be   :  { %451 = vpow2.f32 %v272_v50 }
 0x2bf   :  { %v269_v51 = vpop.f32.mrf.mxu3 }
 0x2c4   :  { %v452_v52 = vpop.eup %451 }
 0x2c5   :  { %v274_v53 = vadd.f32 1.0, %v452_v52 }
 0x2c7   :  { %453 = vrcp.f32 %v274_v53  ;;  %v286_v57 = vand.u32 2147483648, %v274_v53  ;;  %v284_v59 = vand.u32 2147483647, %v274_v53  ;;  %vm280_vm5 = vweird.f32 %v274_v53 }
 0x2c9   :  { %v287_v61 = vor.u32 1.1754944e-38, %v286_v57  ;;  %vm285_vm7 = vcmp.eq.f32.partialorder %v284_v59, 8.507059e+37 }
 0x2cd   :  { %v454_v54 = vpop.eup %453 }
 0x2ce   :  { %v276_v55 = vmul.f32 %v454_v54, %v274_v53  ;;  %vm281_vm4 = vweird.f32 %v454_v54 }
 0x2cf   :  { %vm282_vm6 = vmor %vm280_vm5, %vm281_vm4 }
 0x2d0   :  { %v277_v56 = vsub.f32 1.0, %v276_v55 }
 0x2d2   :  { %v278_v58 = vmul.f32 %v454_v54, %v277_v56 }
 0x2d4   :  { %v279_v60 = vadd.f32 %v454_v54, %v278_v58 }
 0x2d6   :  { %v283_v62 = vsel %vm282_vm6, %v454_v54, %v279_v60 }
 0x2d7   :  { %v288_v63 = vsel %vm285_vm7, %v287_v61, %v283_v62 }
 0x2d8   :  { %290 = vst.msk [vmem:[#allocation2] sm:$0xff] %vm101_vm1, %v288_v63 }
 0x2d9   :  { %308 = dma.vmem_to_hbm [thread:$0]  %s304_s13, 128, %s306_s20, [#allocation3]  }
 0x2da   :  { %551 = dma.done.wait [#allocation3], 128  }
 0x2db   :  { %552 = vsyncadd [#allocation3], 4294967168 }
 0x2dc   :  { %553 = dma.done.wait [#allocation5], 256  }
 0x2dd   :  { %554 = vsyncadd [#allocation5], 4294967040 }
 0x2de   :  { %555 = dma.done.wait [#allocation8], 128  }
 0x2df   :  { %556 = vsyncadd [#allocation8], 4294967168 }
 0x2e0   :  { %358 = vsyncpa [#allocation3], 1 }
 0x2e1   :  { %359 = vsyncpa [#allocation5], 1 }
 0x2e2   :  { %360 = vsyncpa [#allocation8], 1 }

</bundles_post_ra>
